<compile_context>
chip_gen: v7x
topology: tpu7x:2x2x1
jax: 0.10.0
libtpu: 0.0.40
codegen_flags: <defaults>
</compile_context>

<pallas_src>
import functools

import jax
import jax.numpy as jnp
from jax.experimental import pallas as pl
from jax.experimental.pallas import tpu as pltpu  # noqa: F401  (TPU backend)


# ----------------------------------------------------------------------------
# Fused kernel: n_layers LSTM cells (one timestep) + fc_out, all in VMEM.
# ----------------------------------------------------------------------------
def _decoder_lstm_kernel(n_layers, x_ref, h0_ref, c0_ref, *refs):
    # refs = [wx_0, wh_0, b_0, ..., wx_{L-1}, wh_{L-1}, b_{L-1},
    #         w_fc, b_fc, pred_ref, h_out_ref, c_out_ref]
    layer_refs = refs[: 3 * n_layers]
    w_fc_ref, b_fc_ref, pred_ref, h_out_ref, c_out_ref = refs[3 * n_layers:]

    x = x_ref[...].astype(jnp.float32)                      # (B, H)

    for l in range(n_layers):                               # unrolled at trace time
        wx_ref, wh_ref, b_ref = layer_refs[3 * l: 3 * l + 3]
        h = h0_ref[l].astype(jnp.float32)                   # (B, H)
        c = c0_ref[l].astype(jnp.float32)                   # (B, H)

        # Per-gate matmuls (static leading-axis weight selection -> no
        # cross-lane gate slicing).  PyTorch gate order: [i, f, g, o].
        def gate(g):
            return (jnp.dot(x, wx_ref[g], preferred_element_type=jnp.float32)
                    + jnp.dot(h, wh_ref[g], preferred_element_type=jnp.float32)
                    + b_ref[g])                             # (B, H)

        i_g = jax.nn.sigmoid(gate(0))
        f_g = jax.nn.sigmoid(gate(1))
        g_g = jnp.tanh(gate(2))
        o_g = jax.nn.sigmoid(gate(3))

        c_new = f_g * c + i_g * g_g
        h_new = o_g * jnp.tanh(c_new)

        h_out_ref[l] = h_new.astype(h_out_ref.dtype)
        c_out_ref[l] = c_new.astype(c_out_ref.dtype)
        x = h_new   # inter-layer dropout: identity in eval mode

    # fc_out on the top-layer output (seq_len == 1 -> output.squeeze(0) == x)
    pred_ref[...] = (jnp.dot(x, w_fc_ref[...], preferred_element_type=jnp.float32)
                     + b_fc_ref[...]).astype(pred_ref.dtype)


@jax.jit
def decoder_lstm_forward(prepared, inp, hidden, cell):
    """inp: (B, H); hidden, cell: (n_layers, B, H).

    Returns (prediction (B, output_dim), hidden (L, B, H), cell (L, B, H)).
    """
    B, H = inp.shape
    L = hidden.shape[0]
    O = prepared["w_fc"].shape[1]

    flat_w = []
    for (wx, wh, b) in prepared["layers"]:
        flat_w += [wx, wh, b]

    kernel = functools.partial(_decoder_lstm_kernel, L)
    pred, h_out, c_out = pl.pallas_call(
        kernel,
        # No grid: single invocation, every operand is a full-array VMEM block.
        out_shape=(jax.ShapeDtypeStruct((B, O), jnp.float32),
                   jax.ShapeDtypeStruct((L, B, H), jnp.float32),
                   jax.ShapeDtypeStruct((L, B, H), jnp.float32)),
    )(inp, hidden, cell, *flat_w, prepared["w_fc"], prepared["b_fc"])
    return pred, h_out, c_out


# ----------------------------------------------------------------------------
# Parameter handling
# ----------------------------------------------------------------------------
def init_params(key, output_dim, hid_dim, n_layers):
    """PyTorch-layout params: lstm[(W_ih (4H,H), W_hh (4H,H), b_ih, b_hh)], fc."""
    k = 1.0 / jnp.sqrt(hid_dim)
    lstm = []
    for _ in range(n_layers):
        key, k1, k2, k3, k4 = jax.random.split(key, 5)
        lstm.append((
            jax.random.uniform(k1, (4 * hid_dim, hid_dim), jnp.float32, -k, k),
            jax.random.uniform(k2, (4 * hid_dim, hid_dim), jnp.float32, -k, k),
            jax.random.uniform(k3, (4 * hid_dim,), jnp.float32, -k, k),
            jax.random.uniform(k4, (4 * hid_dim,), jnp.float32, -k, k),
        ))
    key, k5, k6 = jax.random.split(key, 3)
    w_fc = jax.random.uniform(k5, (output_dim, hid_dim), jnp.float32, -k, k)
    b_fc = jax.random.uniform(k6, (output_dim,), jnp.float32, -k, k)
    return {"lstm": lstm, "w_fc": w_fc, "b_fc": b_fc}


def prepare_params(torch_params):
    """One-time transpose/split so the kernel does zero layout work per call."""
    layers = []
    for (w_ih, w_hh, b_ih, b_hh) in torch_params["lstm"]:
        H4, H_in = w_ih.shape
        H = H4 // 4
        wx = jnp.transpose(w_ih.reshape(4, H, H_in), (0, 2, 1))   # (4, H_in, H)
        wh = jnp.transpose(w_hh.reshape(4, H, H), (0, 2, 1))      # (4, H, H)
        b = (b_ih + b_hh).reshape(4, 1, H)                        # (4, 1, H)
        layers.append((wx, wh, b))
    return {
        "layers": layers,
        "w_fc": torch_params["w_fc"].T,          # (H, O)
        "b_fc": torch_params["b_fc"][None, :],   # (1, O)
    }


# ----------------------------------------------------------------------------
# Pure-JAX reference (torch-layout params) for correctness check
# ----------------------------------------------------------------------------
def reference_forward(torch_params, inp, hidden, cell):
    x = inp
    h_list, c_list = [], []
    for (w_ih, w_hh, b_ih, b_hh), h0, c0 in zip(torch_params["lstm"], hidden, cell):
        H = h0.shape[1]
        gates = x @ w_ih.T + b_ih + h0 @ w_hh.T + b_hh
        i = jax.nn.sigmoid(gates[:, 0:H])
        f = jax.nn.sigmoid(gates[:, H:2 * H])
        g = jnp.tanh(gates[:, 2 * H:3 * H])
        o = jax.nn.sigmoid(gates[:, 3 * H:4 * H])
        c_new = f * c0 + i * g
        h_new = o * jnp.tanh(c_new)
        h_list.append(h_new)
        c_list.append(c_new)
        x = h_new
    pred = x @ torch_params["w_fc"].T + torch_params["b_fc"]
    return pred, jnp.stack(h_list), jnp.stack(c_list)


if __name__ == "__main__":
    # Decoder_LSTM(output_dim, hid_dim, n_layers, dropout)
    output_dim, hid_dim, n_layers, dropout = 8, 32, 2, 0.1
    batch = 2

    key = jax.random.PRNGKey(0)
    kp, kx, kh, kc = jax.random.split(key, 4)
    torch_params = init_params(kp, output_dim, hid_dim, n_layers)
    prepared = prepare_params(torch_params)

    inp = jax.random.normal(kx, (batch, hid_dim), jnp.float32)          # decoder input
    hidden = jax.random.normal(kh, (n_layers, batch, hid_dim), jnp.float32)
    cell = jax.random.normal(kc, (n_layers, batch, hid_dim), jnp.float32)

    prediction, hidden_out, cell_out = decoder_lstm_forward(prepared, inp, hidden, cell)
    jax.block_until_ready((prediction, hidden_out, cell_out))

    # sanity check vs pure-JAX reference
    p_ref, h_ref, c_ref = reference_forward(torch_params, inp, hidden, cell)
    assert prediction.shape == (batch, output_dim)
    assert hidden_out.shape == (n_layers, batch, hid_dim)
    assert cell_out.shape == (n_layers, batch, hid_dim)
    assert jnp.allclose(prediction, p_ref, atol=1e-4, rtol=1e-4)
    assert jnp.allclose(hidden_out, h_ref, atol=1e-4, rtol=1e-4)
    assert jnp.allclose(cell_out, c_ref, atol=1e-4, rtol=1e-4)

    print("KERNEL_OK")
</pallas_src>

<mosaic_0001>
module attributes {stable_mosaic.version = 11 : i64} {
  func.func @_decoder_lstm_kernel(%arg0: memref<2x32xf32, #tpu.memory_space<vmem>>, %arg1: memref<2x2x32xf32, #tpu.memory_space<vmem>>, %arg2: memref<2x2x32xf32, #tpu.memory_space<vmem>>, %arg3: memref<4x32x32xf32, #tpu.memory_space<vmem>>, %arg4: memref<4x32x32xf32, #tpu.memory_space<vmem>>, %arg5: memref<4x1x32xf32, #tpu.memory_space<vmem>>, %arg6: memref<4x32x32xf32, #tpu.memory_space<vmem>>, %arg7: memref<4x32x32xf32, #tpu.memory_space<vmem>>, %arg8: memref<4x1x32xf32, #tpu.memory_space<vmem>>, %arg9: memref<32x8xf32, #tpu.memory_space<vmem>>, %arg10: memref<1x8xf32, #tpu.memory_space<vmem>>, %arg11: memref<2x8xf32, #tpu.memory_space<vmem>>, %arg12: memref<2x2x32xf32, #tpu.memory_space<vmem>>, %arg13: memref<2x2x32xf32, #tpu.memory_space<vmem>>) attributes {dimension_semantics = [], scalar_prefetch = 0 : i64, scratch_operands = 0 : i64, tpu.core_type = #tpu.core_type<tc>} {
    %c0 = arith.constant 0 : index
    %c0_0 = arith.constant 0 : index
    %0 = vector.load %arg0[%c0, %c0_0] : memref<2x32xf32, #tpu.memory_space<vmem>>, vector<2x32xf32>
    %c0_1 = arith.constant 0 : index
    %c0_2 = arith.constant 0 : index
    %c0_3 = arith.constant 0 : index
    %1 = vector.load %arg1[%c0_1, %c0_2, %c0_3] : memref<2x2x32xf32, #tpu.memory_space<vmem>>, vector<1x2x32xf32>
    %2 = vector.shape_cast %1 : vector<1x2x32xf32> to vector<2x32xf32>
    %c0_4 = arith.constant 0 : index
    %c0_5 = arith.constant 0 : index
    %c0_6 = arith.constant 0 : index
    %3 = vector.load %arg2[%c0_4, %c0_5, %c0_6] : memref<2x2x32xf32, #tpu.memory_space<vmem>>, vector<1x2x32xf32>
    %4 = vector.shape_cast %3 : vector<1x2x32xf32> to vector<2x32xf32>
    %c0_7 = arith.constant 0 : index
    %c0_8 = arith.constant 0 : index
    %c0_9 = arith.constant 0 : index
    %5 = vector.load %arg3[%c0_7, %c0_8, %c0_9] : memref<4x32x32xf32, #tpu.memory_space<vmem>>, vector<1x32x32xf32>
    %6 = vector.shape_cast %5 : vector<1x32x32xf32> to vector<32x32xf32>
    %cst = arith.constant dense<0.000000e+00> : vector<2x32xf32>
    %7 = tpu.matmul %0, %6, %cst {dimension_numbers = #tpu.dot_dimension_numbers<[1], [0], [0], [1], [0, 0, 1, 1], [], []>} : vector<2x32xf32>, vector<32x32xf32>, vector<2x32xf32> -> vector<2x32xf32>
    %c0_10 = arith.constant 0 : index
    %c0_11 = arith.constant 0 : index
    %c0_12 = arith.constant 0 : index
    %8 = vector.load %arg4[%c0_10, %c0_11, %c0_12] : memref<4x32x32xf32, #tpu.memory_space<vmem>>, vector<1x32x32xf32>
    %9 = vector.shape_cast %8 : vector<1x32x32xf32> to vector<32x32xf32>
    %cst_13 = arith.constant dense<0.000000e+00> : vector<2x32xf32>
    %10 = tpu.matmul %2, %9, %cst_13 {dimension_numbers = #tpu.dot_dimension_numbers<[1], [0], [0], [1], [0, 0, 1, 1], [], []>} : vector<2x32xf32>, vector<32x32xf32>, vector<2x32xf32> -> vector<2x32xf32>
    %11 = arith.addf %7, %10 : vector<2x32xf32>
    %c0_14 = arith.constant 0 : index
    %c0_15 = arith.constant 0 : index
    %c0_16 = arith.constant 0 : index
    %12 = vector.load %arg5[%c0_14, %c0_15, %c0_16] : memref<4x1x32xf32, #tpu.memory_space<vmem>>, vector<1x1x32xf32>
    %13 = vector.shape_cast %12 : vector<1x1x32xf32> to vector<1x32xf32>
    %14 = vector.broadcast %13 : vector<1x32xf32> to vector<2x32xf32>
    %15 = arith.addf %11, %14 : vector<2x32xf32>
    %16 = arith.negf %15 : vector<2x32xf32>
    %17 = math.exp %16 : vector<2x32xf32>
    %cst_17 = arith.constant 1.000000e+00 : f32
    %18 = vector.broadcast %cst_17 : f32 to vector<2x32xf32>
    %19 = arith.addf %18, %17 : vector<2x32xf32>
    %20 = arith.divf %18, %19 : vector<2x32xf32>
    %c1 = arith.constant 1 : index
    %c0_18 = arith.constant 0 : index
    %c0_19 = arith.constant 0 : index
    %21 = vector.load %arg3[%c1, %c0_18, %c0_19] : memref<4x32x32xf32, #tpu.memory_space<vmem>>, vector<1x32x32xf32>
    %22 = vector.shape_cast %21 : vector<1x32x32xf32> to vector<32x32xf32>
    %cst_20 = arith.constant dense<0.000000e+00> : vector<2x32xf32>
    %23 = tpu.matmul %0, %22, %cst_20 {dimension_numbers = #tpu.dot_dimension_numbers<[1], [0], [0], [1], [0, 0, 1, 1], [], []>} : vector<2x32xf32>, vector<32x32xf32>, vector<2x32xf32> -> vector<2x32xf32>
    %c1_21 = arith.constant 1 : index
    %c0_22 = arith.constant 0 : index
    %c0_23 = arith.constant 0 : index
    %24 = vector.load %arg4[%c1_21, %c0_22, %c0_23] : memref<4x32x32xf32, #tpu.memory_space<vmem>>, vector<1x32x32xf32>
    %25 = vector.shape_cast %24 : vector<1x32x32xf32> to vector<32x32xf32>
    %cst_24 = arith.constant dense<0.000000e+00> : vector<2x32xf32>
    %26 = tpu.matmul %2, %25, %cst_24 {dimension_numbers = #tpu.dot_dimension_numbers<[1], [0], [0], [1], [0, 0, 1, 1], [], []>} : vector<2x32xf32>, vector<32x32xf32>, vector<2x32xf32> -> vector<2x32xf32>
    %27 = arith.addf %23, %26 : vector<2x32xf32>
    %c1_25 = arith.constant 1 : index
    %c0_26 = arith.constant 0 : index
    %c0_27 = arith.constant 0 : index
    %28 = vector.load %arg5[%c1_25, %c0_26, %c0_27] : memref<4x1x32xf32, #tpu.memory_space<vmem>>, vector<1x1x32xf32>
    %29 = vector.shape_cast %28 : vector<1x1x32xf32> to vector<1x32xf32>
    %30 = vector.broadcast %29 : vector<1x32xf32> to vector<2x32xf32>
    %31 = arith.addf %27, %30 : vector<2x32xf32>
    %32 = arith.negf %31 : vector<2x32xf32>
    %33 = math.exp %32 : vector<2x32xf32>
    %cst_28 = arith.constant 1.000000e+00 : f32
    %34 = vector.broadcast %cst_28 : f32 to vector<2x32xf32>
    %35 = arith.addf %34, %33 : vector<2x32xf32>
    %36 = arith.divf %34, %35 : vector<2x32xf32>
    %c2 = arith.constant 2 : index
    %c0_29 = arith.constant 0 : index
    %c0_30 = arith.constant 0 : index
    %37 = vector.load %arg3[%c2, %c0_29, %c0_30] : memref<4x32x32xf32, #tpu.memory_space<vmem>>, vector<1x32x32xf32>
    %38 = vector.shape_cast %37 : vector<1x32x32xf32> to vector<32x32xf32>
    %cst_31 = arith.constant dense<0.000000e+00> : vector<2x32xf32>
    %39 = tpu.matmul %0, %38, %cst_31 {dimension_numbers = #tpu.dot_dimension_numbers<[1], [0], [0], [1], [0, 0, 1, 1], [], []>} : vector<2x32xf32>, vector<32x32xf32>, vector<2x32xf32> -> vector<2x32xf32>
    %c2_32 = arith.constant 2 : index
    %c0_33 = arith.constant 0 : index
    %c0_34 = arith.constant 0 : index
    %40 = vector.load %arg4[%c2_32, %c0_33, %c0_34] : memref<4x32x32xf32, #tpu.memory_space<vmem>>, vector<1x32x32xf32>
    %41 = vector.shape_cast %40 : vector<1x32x32xf32> to vector<32x32xf32>
    %cst_35 = arith.constant dense<0.000000e+00> : vector<2x32xf32>
    %42 = tpu.matmul %2, %41, %cst_35 {dimension_numbers = #tpu.dot_dimension_numbers<[1], [0], [0], [1], [0, 0, 1, 1], [], []>} : vector<2x32xf32>, vector<32x32xf32>, vector<2x32xf32> -> vector<2x32xf32>
    %43 = arith.addf %39, %42 : vector<2x32xf32>
    %c2_36 = arith.constant 2 : index
    %c0_37 = arith.constant 0 : index
    %c0_38 = arith.constant 0 : index
    %44 = vector.load %arg5[%c2_36, %c0_37, %c0_38] : memref<4x1x32xf32, #tpu.memory_space<vmem>>, vector<1x1x32xf32>
    %45 = vector.shape_cast %44 : vector<1x1x32xf32> to vector<1x32xf32>
    %46 = vector.broadcast %45 : vector<1x32xf32> to vector<2x32xf32>
    %47 = arith.addf %43, %46 : vector<2x32xf32>
    %48 = math.tanh %47 : vector<2x32xf32>
    %c3 = arith.constant 3 : index
    %c0_39 = arith.constant 0 : index
    %c0_40 = arith.constant 0 : index
    %49 = vector.load %arg3[%c3, %c0_39, %c0_40] : memref<4x32x32xf32, #tpu.memory_space<vmem>>, vector<1x32x32xf32>
    %50 = vector.shape_cast %49 : vector<1x32x32xf32> to vector<32x32xf32>
    %cst_41 = arith.constant dense<0.000000e+00> : vector<2x32xf32>
    %51 = tpu.matmul %0, %50, %cst_41 {dimension_numbers = #tpu.dot_dimension_numbers<[1], [0], [0], [1], [0, 0, 1, 1], [], []>} : vector<2x32xf32>, vector<32x32xf32>, vector<2x32xf32> -> vector<2x32xf32>
    %c3_42 = arith.constant 3 : index
    %c0_43 = arith.constant 0 : index
    %c0_44 = arith.constant 0 : index
    %52 = vector.load %arg4[%c3_42, %c0_43, %c0_44] : memref<4x32x32xf32, #tpu.memory_space<vmem>>, vector<1x32x32xf32>
    %53 = vector.shape_cast %52 : vector<1x32x32xf32> to vector<32x32xf32>
    %cst_45 = arith.constant dense<0.000000e+00> : vector<2x32xf32>
    %54 = tpu.matmul %2, %53, %cst_45 {dimension_numbers = #tpu.dot_dimension_numbers<[1], [0], [0], [1], [0, 0, 1, 1], [], []>} : vector<2x32xf32>, vector<32x32xf32>, vector<2x32xf32> -> vector<2x32xf32>
    %55 = arith.addf %51, %54 : vector<2x32xf32>
    %c3_46 = arith.constant 3 : index
    %c0_47 = arith.constant 0 : index
    %c0_48 = arith.constant 0 : index
    %56 = vector.load %arg5[%c3_46, %c0_47, %c0_48] : memref<4x1x32xf32, #tpu.memory_space<vmem>>, vector<1x1x32xf32>
    %57 = vector.shape_cast %56 : vector<1x1x32xf32> to vector<1x32xf32>
    %58 = vector.broadcast %57 : vector<1x32xf32> to vector<2x32xf32>
    %59 = arith.addf %55, %58 : vector<2x32xf32>
    %60 = arith.negf %59 : vector<2x32xf32>
    %61 = math.exp %60 : vector<2x32xf32>
    %cst_49 = arith.constant 1.000000e+00 : f32
    %62 = vector.broadcast %cst_49 : f32 to vector<2x32xf32>
    %63 = arith.addf %62, %61 : vector<2x32xf32>
    %64 = arith.divf %62, %63 : vector<2x32xf32>
    %65 = arith.mulf %36, %4 : vector<2x32xf32>
    %66 = arith.mulf %20, %48 : vector<2x32xf32>
    %67 = arith.addf %65, %66 : vector<2x32xf32>
    %68 = math.tanh %67 : vector<2x32xf32>
    %69 = arith.mulf %64, %68 : vector<2x32xf32>
    %c0_50 = arith.constant 0 : index
    %c0_51 = arith.constant 0 : index
    %c0_52 = arith.constant 0 : index
    %70 = vector.load %arg12[%c0_50, %c0_51, %c0_52] : memref<2x2x32xf32, #tpu.memory_space<vmem>>, vector<1x2x32xf32>
    %71 = vector.shape_cast %70 : vector<1x2x32xf32> to vector<2x32xf32>
    %72 = vector.shape_cast %69 : vector<2x32xf32> to vector<1x2x32xf32>
    tpu.vector_store %arg12[%c0_50, %c0_51, %c0_52], %72 {strides = array<i32>} : memref<2x2x32xf32, #tpu.memory_space<vmem>>, vector<1x2x32xf32>,
    %c0_53 = arith.constant 0 : index
    %c0_54 = arith.constant 0 : index
    %c0_55 = arith.constant 0 : index
    %73 = vector.load %arg13[%c0_53, %c0_54, %c0_55] : memref<2x2x32xf32, #tpu.memory_space<vmem>>, vector<1x2x32xf32>
    %74 = vector.shape_cast %73 : vector<1x2x32xf32> to vector<2x32xf32>
    %75 = vector.shape_cast %67 : vector<2x32xf32> to vector<1x2x32xf32>
    tpu.vector_store %arg13[%c0_53, %c0_54, %c0_55], %75 {strides = array<i32>} : memref<2x2x32xf32, #tpu.memory_space<vmem>>, vector<1x2x32xf32>,
    %c1_56 = arith.constant 1 : index
    %c0_57 = arith.constant 0 : index
    %c0_58 = arith.constant 0 : index
    %76 = vector.load %arg1[%c1_56, %c0_57, %c0_58] : memref<2x2x32xf32, #tpu.memory_space<vmem>>, vector<1x2x32xf32>
    %77 = vector.shape_cast %76 : vector<1x2x32xf32> to vector<2x32xf32>
    %c1_59 = arith.constant 1 : index
    %c0_60 = arith.constant 0 : index
    %c0_61 = arith.constant 0 : index
    %78 = vector.load %arg2[%c1_59, %c0_60, %c0_61] : memref<2x2x32xf32, #tpu.memory_space<vmem>>, vector<1x2x32xf32>
    %79 = vector.shape_cast %78 : vector<1x2x32xf32> to vector<2x32xf32>
    %c0_62 = arith.constant 0 : index
    %c0_63 = arith.constant 0 : index
    %c0_64 = arith.constant 0 : index
    %80 = vector.load %arg6[%c0_62, %c0_63, %c0_64] : memref<4x32x32xf32, #tpu.memory_space<vmem>>, vector<1x32x32xf32>
    %81 = vector.shape_cast %80 : vector<1x32x32xf32> to vector<32x32xf32>
    %cst_65 = arith.constant dense<0.000000e+00> : vector<2x32xf32>
    %82 = tpu.matmul %69, %81, %cst_65 {dimension_numbers = #tpu.dot_dimension_numbers<[1], [0], [0], [1], [0, 0, 1, 1], [], []>} : vector<2x32xf32>, vector<32x32xf32>, vector<2x32xf32> -> vector<2x32xf32>
    %c0_66 = arith.constant 0 : index
    %c0_67 = arith.constant 0 : index
    %c0_68 = arith.constant 0 : index
    %83 = vector.load %arg7[%c0_66, %c0_67, %c0_68] : memref<4x32x32xf32, #tpu.memory_space<vmem>>, vector<1x32x32xf32>
    %84 = vector.shape_cast %83 : vector<1x32x32xf32> to vector<32x32xf32>
    %cst_69 = arith.constant dense<0.000000e+00> : vector<2x32xf32>
    %85 = tpu.matmul %77, %84, %cst_69 {dimension_numbers = #tpu.dot_dimension_numbers<[1], [0], [0], [1], [0, 0, 1, 1], [], []>} : vector<2x32xf32>, vector<32x32xf32>, vector<2x32xf32> -> vector<2x32xf32>
    %86 = arith.addf %82, %85 : vector<2x32xf32>
    %c0_70 = arith.constant 0 : index
    %c0_71 = arith.constant 0 : index
    %c0_72 = arith.constant 0 : index
    %87 = vector.load %arg8[%c0_70, %c0_71, %c0_72] : memref<4x1x32xf32, #tpu.memory_space<vmem>>, vector<1x1x32xf32>
    %88 = vector.shape_cast %87 : vector<1x1x32xf32> to vector<1x32xf32>
    %89 = vector.broadcast %88 : vector<1x32xf32> to vector<2x32xf32>
    %90 = arith.addf %86, %89 : vector<2x32xf32>
    %91 = arith.negf %90 : vector<2x32xf32>
    %92 = math.exp %91 : vector<2x32xf32>
    %cst_73 = arith.constant 1.000000e+00 : f32
    %93 = vector.broadcast %cst_73 : f32 to vector<2x32xf32>
    %94 = arith.addf %93, %92 : vector<2x32xf32>
    %95 = arith.divf %93, %94 : vector<2x32xf32>
    %c1_74 = arith.constant 1 : index
    %c0_75 = arith.constant 0 : index
    %c0_76 = arith.constant 0 : index
    %96 = vector.load %arg6[%c1_74, %c0_75, %c0_76] : memref<4x32x32xf32, #tpu.memory_space<vmem>>, vector<1x32x32xf32>
    %97 = vector.shape_cast %96 : vector<1x32x32xf32> to vector<32x32xf32>
    %cst_77 = arith.constant dense<0.000000e+00> : vector<2x32xf32>
    %98 = tpu.matmul %69, %97, %cst_77 {dimension_numbers = #tpu.dot_dimension_numbers<[1], [0], [0], [1], [0, 0, 1, 1], [], []>} : vector<2x32xf32>, vector<32x32xf32>, vector<2x32xf32> -> vector<2x32xf32>
    %c1_78 = arith.constant 1 : index
    %c0_79 = arith.constant 0 : index
    %c0_80 = arith.constant 0 : index
    %99 = vector.load %arg7[%c1_78, %c0_79, %c0_80] : memref<4x32x32xf32, #tpu.memory_space<vmem>>, vector<1x32x32xf32>
    %100 = vector.shape_cast %99 : vector<1x32x32xf32> to vector<32x32xf32>
    %cst_81 = arith.constant dense<0.000000e+00> : vector<2x32xf32>
    %101 = tpu.matmul %77, %100, %cst_81 {dimension_numbers = #tpu.dot_dimension_numbers<[1], [0], [0], [1], [0, 0, 1, 1], [], []>} : vector<2x32xf32>, vector<32x32xf32>, vector<2x32xf32> -> vector<2x32xf32>
    %102 = arith.addf %98, %101 : vector<2x32xf32>
    %c1_82 = arith.constant 1 : index
    %c0_83 = arith.constant 0 : index
    %c0_84 = arith.constant 0 : index
    %103 = vector.load %arg8[%c1_82, %c0_83, %c0_84] : memref<4x1x32xf32, #tpu.memory_space<vmem>>, vector<1x1x32xf32>
    %104 = vector.shape_cast %103 : vector<1x1x32xf32> to vector<1x32xf32>
    %105 = vector.broadcast %104 : vector<1x32xf32> to vector<2x32xf32>
    %106 = arith.addf %102, %105 : vector<2x32xf32>
    %107 = arith.negf %106 : vector<2x32xf32>
    %108 = math.exp %107 : vector<2x32xf32>
    %cst_85 = arith.constant 1.000000e+00 : f32
    %109 = vector.broadcast %cst_85 : f32 to vector<2x32xf32>
    %110 = arith.addf %109, %108 : vector<2x32xf32>
    %111 = arith.divf %109, %110 : vector<2x32xf32>
    %c2_86 = arith.constant 2 : index
    %c0_87 = arith.constant 0 : index
    %c0_88 = arith.constant 0 : index
    %112 = vector.load %arg6[%c2_86, %c0_87, %c0_88] : memref<4x32x32xf32, #tpu.memory_space<vmem>>, vector<1x32x32xf32>
    %113 = vector.shape_cast %112 : vector<1x32x32xf32> to vector<32x32xf32>
    %cst_89 = arith.constant dense<0.000000e+00> : vector<2x32xf32>
    %114 = tpu.matmul %69, %113, %cst_89 {dimension_numbers = #tpu.dot_dimension_numbers<[1], [0], [0], [1], [0, 0, 1, 1], [], []>} : vector<2x32xf32>, vector<32x32xf32>, vector<2x32xf32> -> vector<2x32xf32>
    %c2_90 = arith.constant 2 : index
    %c0_91 = arith.constant 0 : index
    %c0_92 = arith.constant 0 : index
    %115 = vector.load %arg7[%c2_90, %c0_91, %c0_92] : memref<4x32x32xf32, #tpu.memory_space<vmem>>, vector<1x32x32xf32>
    %116 = vector.shape_cast %115 : vector<1x32x32xf32> to vector<32x32xf32>
    %cst_93 = arith.constant dense<0.000000e+00> : vector<2x32xf32>
    %117 = tpu.matmul %77, %116, %cst_93 {dimension_numbers = #tpu.dot_dimension_numbers<[1], [0], [0], [1], [0, 0, 1, 1], [], []>} : vector<2x32xf32>, vector<32x32xf32>, vector<2x32xf32> -> vector<2x32xf32>
    %118 = arith.addf %114, %117 : vector<2x32xf32>
    %c2_94 = arith.constant 2 : index
    %c0_95 = arith.constant 0 : index
    %c0_96 = arith.constant 0 : index
    %119 = vector.load %arg8[%c2_94, %c0_95, %c0_96] : memref<4x1x32xf32, #tpu.memory_space<vmem>>, vector<1x1x32xf32>
    %120 = vector.shape_cast %119 : vector<1x1x32xf32> to vector<1x32xf32>
    %121 = vector.broadcast %120 : vector<1x32xf32> to vector<2x32xf32>
    %122 = arith.addf %118, %121 : vector<2x32xf32>
    %123 = math.tanh %122 : vector<2x32xf32>
    %c3_97 = arith.constant 3 : index
    %c0_98 = arith.constant 0 : index
    %c0_99 = arith.constant 0 : index
    %124 = vector.load %arg6[%c3_97, %c0_98, %c0_99] : memref<4x32x32xf32, #tpu.memory_space<vmem>>, vector<1x32x32xf32>
    %125 = vector.shape_cast %124 : vector<1x32x32xf32> to vector<32x32xf32>
    %cst_100 = arith.constant dense<0.000000e+00> : vector<2x32xf32>
    %126 = tpu.matmul %69, %125, %cst_100 {dimension_numbers = #tpu.dot_dimension_numbers<[1], [0], [0], [1], [0, 0, 1, 1], [], []>} : vector<2x32xf32>, vector<32x32xf32>, vector<2x32xf32> -> vector<2x32xf32>
    %c3_101 = arith.constant 3 : index
    %c0_102 = arith.constant 0 : index
    %c0_103 = arith.constant 0 : index
    %127 = vector.load %arg7[%c3_101, %c0_102, %c0_103] : memref<4x32x32xf32, #tpu.memory_space<vmem>>, vector<1x32x32xf32>
    %128 = vector.shape_cast %127 : vector<1x32x32xf32> to vector<32x32xf32>
    %cst_104 = arith.constant dense<0.000000e+00> : vector<2x32xf32>
    %129 = tpu.matmul %77, %128, %cst_104 {dimension_numbers = #tpu.dot_dimension_numbers<[1], [0], [0], [1], [0, 0, 1, 1], [], []>} : vector<2x32xf32>, vector<32x32xf32>, vector<2x32xf32> -> vector<2x32xf32>
    %130 = arith.addf %126, %129 : vector<2x32xf32>
    %c3_105 = arith.constant 3 : index
    %c0_106 = arith.constant 0 : index
    %c0_107 = arith.constant 0 : index
    %131 = vector.load %arg8[%c3_105, %c0_106, %c0_107] : memref<4x1x32xf32, #tpu.memory_space<vmem>>, vector<1x1x32xf32>
    %132 = vector.shape_cast %131 : vector<1x1x32xf32> to vector<1x32xf32>
    %133 = vector.broadcast %132 : vector<1x32xf32> to vector<2x32xf32>
    %134 = arith.addf %130, %133 : vector<2x32xf32>
    %135 = arith.negf %134 : vector<2x32xf32>
    %136 = math.exp %135 : vector<2x32xf32>
    %cst_108 = arith.constant 1.000000e+00 : f32
    %137 = vector.broadcast %cst_108 : f32 to vector<2x32xf32>
    %138 = arith.addf %137, %136 : vector<2x32xf32>
    %139 = arith.divf %137, %138 : vector<2x32xf32>
    %140 = arith.mulf %111, %79 : vector<2x32xf32>
    %141 = arith.mulf %95, %123 : vector<2x32xf32>
    %142 = arith.addf %140, %141 : vector<2x32xf32>
    %143 = math.tanh %142 : vector<2x32xf32>
    %144 = arith.mulf %139, %143 : vector<2x32xf32>
    %c1_109 = arith.constant 1 : index
    %c0_110 = arith.constant 0 : index
    %c0_111 = arith.constant 0 : index
    %145 = vector.load %arg12[%c1_109, %c0_110, %c0_111] : memref<2x2x32xf32, #tpu.memory_space<vmem>>, vector<1x2x32xf32>
    %146 = vector.shape_cast %145 : vector<1x2x32xf32> to vector<2x32xf32>
    %147 = vector.shape_cast %144 : vector<2x32xf32> to vector<1x2x32xf32>
    tpu.vector_store %arg12[%c1_109, %c0_110, %c0_111], %147 {strides = array<i32>} : memref<2x2x32xf32, #tpu.memory_space<vmem>>, vector<1x2x32xf32>,
    %c1_112 = arith.constant 1 : index
    %c0_113 = arith.constant 0 : index
    %c0_114 = arith.constant 0 : index
    %148 = vector.load %arg13[%c1_112, %c0_113, %c0_114] : memref<2x2x32xf32, #tpu.memory_space<vmem>>, vector<1x2x32xf32>
    %149 = vector.shape_cast %148 : vector<1x2x32xf32> to vector<2x32xf32>
    %150 = vector.shape_cast %142 : vector<2x32xf32> to vector<1x2x32xf32>
    tpu.vector_store %arg13[%c1_112, %c0_113, %c0_114], %150 {strides = array<i32>} : memref<2x2x32xf32, #tpu.memory_space<vmem>>, vector<1x2x32xf32>,
    %c0_115 = arith.constant 0 : index
    %c0_116 = arith.constant 0 : index
    %151 = vector.load %arg9[%c0_115, %c0_116] : memref<32x8xf32, #tpu.memory_space<vmem>>, vector<32x8xf32>
    %cst_117 = arith.constant dense<0.000000e+00> : vector<2x8xf32>
    %152 = tpu.matmul %144, %151, %cst_117 {dimension_numbers = #tpu.dot_dimension_numbers<[1], [0], [0], [1], [0, 0, 1, 1], [], []>} : vector<2x32xf32>, vector<32x8xf32>, vector<2x8xf32> -> vector<2x8xf32>
    %c0_118 = arith.constant 0 : index
    %c0_119 = arith.constant 0 : index
    %153 = vector.load %arg10[%c0_118, %c0_119] : memref<1x8xf32, #tpu.memory_space<vmem>>, vector<1x8xf32>
    %154 = vector.broadcast %153 : vector<1x8xf32> to vector<2x8xf32>
    %155 = arith.addf %152, %154 : vector<2x8xf32>
    %c0_120 = arith.constant 0 : index
    %c0_121 = arith.constant 0 : index
    %156 = vector.load %arg11[%c0_120, %c0_121] : memref<2x8xf32, #tpu.memory_space<vmem>>, vector<2x8xf32>
    tpu.vector_store %arg11[%c0_120, %c0_121], %155 {strides = array<i32>} : memref<2x8xf32, #tpu.memory_space<vmem>>, vector<2x8xf32>,
    return
  }
}

</mosaic_0001>

<bundles_post_ra>
// kernel: decoder_lstm_forward.1
= control target key start
LH: loop header
LB: loop body
LE: loop exit
PB: predicated region body
PF: predicated region fallthrough
CT: control target
= control target key end

     0   :  { %19 = vsyncpa [#allocation3], 0  ;;  %s2546_s0 = inlined_call_operand.vmem [shape: f32[2,32], index: 0, kind: input, shape index: {}]   ;;  %s2547_s1 = inlined_call_operand.vmem [shape: f32[2,2,32], index: 1, kind: input, shape index: {}]   ;;  %s2548_s2 = inlined_call_operand.vmem [shape: f32[2,2,32], index: 2, kind: input, shape index: {}]   ;;  %s2549_s3 = inlined_call_operand.hbm [shape: f32[4,32,32], index: 3, kind: input, shape index: {}]   ;;  %s2550_s4 = inlined_call_operand.hbm [shape: f32[4,32,32], index: 4, kind: input, shape index: {}]   ;;  %s2551_s5 = inlined_call_operand.vmem [shape: f32[4,1,32], index: 5, kind: input, shape index: {}]   ;;  %s2552_s6 = inlined_call_operand.hbm [shape: f32[4,32,32], index: 6, kind: input, shape index: {}]   ;;  %s2553_s7 = inlined_call_operand.hbm [shape: f32[4,32,32], index: 7, kind: input, shape index: {}]   ;;  %s2554_s8 = inlined_call_operand.vmem [shape: f32[4,1,32], index: 8, kind: input, shape index: {}]   ;;  %s2555_s9 = inlined_call_operand.vmem [shape: f32[32,8], index: 9, kind: input, shape index: {}]   ;;  %s2556_s10 = inlined_call_operand.vmem [shape: f32[1,8], index: 10, kind: input, shape index: {}]   ;;  %s2557_s11 = inlined_call_operand.hbm [shape: f32[2,8], index: 11, kind: output, shape index: {0}]   ;;  %s2558_s12 = inlined_call_operand.hbm [shape: f32[2,2,32], index: 12, kind: output, shape index: {1}]   ;;  %s2559_s13 = inlined_call_operand.hbm [shape: f32[2,2,32], index: 13, kind: output, shape index: {2}]  }
   0x1   :  { %20 = vsyncpa [#allocation6], 0 }
   0x2   :  { %21 = vsyncpa [#allocation9], 0 }
   0x3   :  { %22 = vsyncpa [#allocation4], 0 }
   0x4   :  { %23 = vsyncpa [#allocation12], 0  ;;  %s2197_s25 = smov [#allocation5]   ;;  %s2198_s27 = smov [#allocation2]  }
   0x5   :  { %s47_s26 = sshll.u32 %s2197_s25, 4  ;;  %s35_s28 = sshll.u32 %s2198_s27, 4  ;;  %s48_s26 = int_to_ptr.vmem [resolvable:$true] %s47_s26  ;;  %s2281_s28 = int_to_ptr.vmem [resolvable:$true] %s35_s28 }
   0x6   :  { %s2033_s14 = scalar_lea.hbm %s2550_s4, 2048 }
   0x7   :  { %p2034_p0 = scmp.ne.s32.totalorder %s2550_s4, %s2033_s14  ;;  %p2037_p1 = scmp.lt.u32.totalorder %s2033_s14, %s2550_s4 }
   0x9   :  { %p2039_p2 = pnand %p2037_p1, %p2034_p0 }
   0xb   :  { %2042 = shalt.err (!%p2039_p2)
}
   0xc   :  { %s2043_s19 = scalar_lea.vmem %s48_s26, 2048  ;;  %p2048_p4 = scmp.lt.s32.totalorder %s48_s26, %s48_s26 }
   0xd   :  { %p2044_p3 = scmp.ne.s32.totalorder %s48_s26, %s2043_s19  ;;  %p2049_p5 = scmp.lt.s32.totalorder %s2043_s19, %s2043_s19 }
   0xf   :  { %p2050_p6 = por %p2049_p5, %p2048_p4 }
  0x11   :  { %p2051_p7 = pnand %p2050_p6, %p2044_p3 }
  0x13   :  { %2054 = shalt.err (!%p2051_p7)
}
  0x14   :  { %s2199_s20 = smov 128   ;;  %s2200_s21 = smov 8  }
  0x15   :  { %53 = dma.hbm_to_vmem [thread:$0]  %s2550_s4, 2048, %s48_s26, [#allocation6], %s2199_s20, %s2199_s20, %s2200_s21  }
  0x16   :  { %s2055_s27 = scalar_lea.hbm %s2549_s3, 2048 }
  0x17   :  { %p2056_p8 = scmp.ne.s32.totalorder %s2549_s3, %s2055_s27  ;;  %p2059_p9 = scmp.lt.u32.totalorder %s2055_s27, %s2549_s3 }
  0x19   :  { %p2061_p10 = pnand %p2059_p9, %p2056_p8 }
  0x1b   :  { %2064 = shalt.err (!%p2061_p10)
}
  0x1c   :  { %s2065_s16 = scalar_lea.vmem %s2281_s28, 2048  ;;  %p2070_p12 = scmp.lt.s32.totalorder %s2281_s28, %s2281_s28 }
  0x1d   :  { %p2066_p11 = scmp.ne.s32.totalorder %s2281_s28, %s2065_s16  ;;  %p2071_p13 = scmp.lt.s32.totalorder %s2065_s16, %s2065_s16 }
  0x1f   :  { %p2072_p0 = por %p2071_p13, %p2070_p12 }
  0x21   :  { %p2073_p1 = pnand %p2072_p0, %p2066_p11 }
  0x23   :  { %2076 = shalt.err (!%p2073_p1)
}
  0x24   :  { %41 = dma.hbm_to_vmem [thread:$0]  %s2549_s3, 2048, %s2281_s28, [#allocation3], %s2199_s20, %s2199_s20, %s2200_s21  }
  0x25   :  { %s2201_s17 = smov [#allocation7]   ;;  %s2202_s19 = smov [#allocation8]  }
  0x26   :  { %s61_s18 = sshll.u32 %s2201_s17, 4  ;;  %s73_s22 = sshll.u32 %s2202_s19, 4  ;;  %s62_s18 = int_to_ptr.vmem [resolvable:$true] %s61_s18  ;;  %s2318_s22 = int_to_ptr.vmem [resolvable:$true] %s73_s22 }
  0x27   :  { %s2077_s25 = scalar_lea.hbm %s2552_s6, 2048 }
  0x28   :  { %p2078_p2 = scmp.ne.s32.totalorder %s2552_s6, %s2077_s25  ;;  %p2081_p3 = scmp.lt.u32.totalorder %s2077_s25, %s2552_s6 }
  0x2a   :  { %p2083_p4 = pnand %p2081_p3, %p2078_p2 }
  0x2c   :  { %2086 = shalt.err (!%p2083_p4)
}
  0x2d   :  { %s2087_s3 = scalar_lea.vmem %s62_s18, 2048  ;;  %p2092_p6 = scmp.lt.s32.totalorder %s62_s18, %s62_s18 }
  0x2e   :  { %p2088_p5 = scmp.ne.s32.totalorder %s62_s18, %s2087_s3  ;;  %p2093_p7 = scmp.lt.s32.totalorder %s2087_s3, %s2087_s3 }
  0x30   :  { %p2094_p8 = por %p2093_p7, %p2092_p6 }
  0x32   :  { %p2095_p9 = pnand %p2094_p8, %p2088_p5 }
  0x34   :  { %2098 = shalt.err (!%p2095_p9)
}
  0x35   :  { %67 = dma.hbm_to_vmem [thread:$0]  %s2552_s6, 2048, %s62_s18, [#allocation6], %s2199_s20, %s2199_s20, %s2200_s21  }
  0x36   :  { %s2099_s26 = scalar_lea.hbm %s2553_s7, 2048 }
  0x37   :  { %p2100_p10 = scmp.ne.s32.totalorder %s2553_s7, %s2099_s26  ;;  %p2103_p11 = scmp.lt.u32.totalorder %s2099_s26, %s2553_s7 }
  0x39   :  { %p2105_p12 = pnand %p2103_p11, %p2100_p10 }
  0x3b   :  { %2108 = shalt.err (!%p2105_p12)
}
  0x3c   :  { %s2109_s25 = scalar_lea.vmem %s2318_s22, 2048  ;;  %p2114_p0 = scmp.lt.s32.totalorder %s2318_s22, %s2318_s22 }
  0x3d   :  { %p2110_p13 = scmp.ne.s32.totalorder %s2318_s22, %s2109_s25  ;;  %p2115_p1 = scmp.lt.s32.totalorder %s2109_s25, %s2109_s25 }
  0x3f   :  { %p2116_p2 = por %p2115_p1, %p2114_p0 }
  0x41   :  { %p2117_p3 = pnand %p2116_p2, %p2110_p13 }
  0x43   :  { %2120 = shalt.err (!%p2117_p3)
}
  0x44   :  { %79 = dma.hbm_to_vmem [thread:$0]  %s2553_s7, 2048, %s2318_s22, [#allocation9], %s2199_s20, %s2199_s20, %s2200_s21  }
  0x45   :  { %2187 = dma.done.wait [#allocation3], 2048  }
  0x46   :  { %2188 = vsyncadd [#allocation3], 4294965248 }
  0x47   :  { %2189 = dma.done.wait [#allocation6], 4096  }
  0x48   :  { %2190 = vsyncadd [#allocation6], 4294963200 }
  0x49   :  { %2191 = dma.done.wait [#allocation9], 2048  }
  0x4a   :  { %2192 = vsyncadd [#allocation9], 4294965248  ;;  %v2203_v0 = vmov 0.0|0.0   ;;  %vm2204_vm0 = vmmov 0   ;;  %v2205_v1 = vmov 0.0   ;;  %v105_v2 = vld [vmem:[#allocation5] sm:$0xff] }
  0x4b   :  { %1885 = vmatprep.subr.bf16.mxu0 %v2203_v0  ;;  %1891 = vmatprep.subr.bf16.mxu1 %v2203_v0  ;;  %v106_v3 = vld [vmem:[#allocation5 + $0x8] sm:$0xff]  ;;  %v101_v4 = vld [vmem:[#allocation2] sm:$0xff]  ;;  %v107_v7 = vld [vmem:[#allocation5 + $0x10] sm:$0xff]  ;;  %vm109_vm1 = vcmask 261120   ;;  %vm765_vm2 = vcmask 254976  }
  0x4c   :  { %1706 = vmatprep.mubr.msk.f32.mxu0 %vm2204_vm0, %v2205_v1  ;;  %1717 = vmatprep.mubr.msk.f32.mxu1 %vm2204_vm0, %v2205_v1  ;;  %v1886_v5 = vpack.c.bf16 %v106_v3, %v105_v2  ;;  %v102_v6 = vld [vmem:[#allocation2 + $0x8] sm:$0xff]  ;;  %v108_v8 = vld [vmem:[#allocation5 + $0x18] sm:$0xff]  ;;  %v103_v10 = vld [vmem:[#allocation2 + $0x10] sm:$0xff] }
  0x4d   :  { %v1892_v9 = vpack.c.bf16 %v102_v6, %v101_v4  ;;  %v104_v11 = vld [vmem:[#allocation2 + $0x18] sm:$0xff]  ;;  %v1889_v12 = vpack.c.bf16 %v108_v8, %v107_v7  ;;  %v276_v14 = vld [vmem:[#allocation5 + $0x20] sm:$0xff]  ;;  %v277_v15 = vld [vmem:[#allocation5 + $0x28] sm:$0xff] }
  0x4e   :  { %1887 = vmatpush3.bf16.msra.mxu0 %v1886_v5  ;;  %v1895_v13 = vpack.c.bf16 %v104_v11, %v103_v10  ;;  %v271_v16 = vld [vmem:[#allocation2 + $0x20] sm:$0xff]  ;;  %v272_v17 = vld [vmem:[#allocation2 + $0x28] sm:$0xff]  ;;  %v1898_v19 = vpack.c.bf16 %v277_v15, %v276_v14  ;;  %v278_v22 = vld [vmem:[#allocation5 + $0x30] sm:$0xff] }
  0x4f   :  { %1893 = vmatpush3.bf16.msra.mxu1 %v1892_v9  ;;  %1888 = vmatprep.subr.bf16.mxu0 %v2203_v0  ;;  %v2366_v18 = vld [vmem:[%s2547_s1] sm:$0x3]  ;;  %v1904_v21 = vpack.c.bf16 %v272_v17, %v271_v16  ;;  %v279_v23 = vld [vmem:[#allocation5 + $0x38] sm:$0xff]  ;;  %v273_v24 = vld [vmem:[#allocation2 + $0x30] sm:$0xff] }
  0x50   :  { %1894 = vmatprep.subr.bf16.mxu1 %v2203_v0  ;;  %v2371_v20 = vld [vmem:[%s2546_s0] sm:$0x3]  ;;  %v274_v25 = vld [vmem:[#allocation2 + $0x38] sm:$0xff]  ;;  %v1901_v26 = vpack.c.bf16 %v279_v23, %v278_v22  ;;  %v442_v29 = vld [vmem:[#allocation5 + $0x48] sm:$0xff] }
  0x51   :  { %v1907_v27 = vpack.c.bf16 %v274_v25, %v273_v24  ;;  %v441_v28 = vld [vmem:[#allocation5 + $0x40] sm:$0xff]  ;;  %v437_v31 = vld [vmem:[#allocation2 + $0x48] sm:$0xff]  ;;  %v443_v34 = vld [vmem:[#allocation5 + $0x50] sm:$0xff] }
  0x52   :  { %1890 = vmatpush3.bf16.msra.mxu0 %v1889_v12  ;;  %v436_v30 = vld [vmem:[#allocation2 + $0x40] sm:$0xff]  ;;  %v1910_v32 = vpack.c.bf16 %v442_v29, %v441_v28  ;;  %v444_v35 = vld [vmem:[#allocation5 + $0x58] sm:$0xff]  ;;  %v438_v36 = vld [vmem:[#allocation2 + $0x50] sm:$0xff] }
  0x53   :  { %1896 = vmatpush3.bf16.msra.mxu1 %v1895_v13  ;;  %1897 = vmatprep.subr.bf16.mxu0 %v2203_v0  ;;  %v1916_v33 = vpack.c.bf16 %v437_v31, %v436_v30  ;;  %v439_v37 = vld [vmem:[#allocation2 + $0x58] sm:$0xff]  ;;  %v1913_v38 = vpack.c.bf16 %v444_v35, %v443_v34  ;;  %v601_v40 = vld [vmem:[#allocation5 + $0x60] sm:$0xff]  ;;  %v602_v41 = vld [vmem:[#allocation5 + $0x68] sm:$0xff] }
  0x54   :  { %1903 = vmatprep.subr.bf16.mxu1 %v2203_v0  ;;  %v1919_v39 = vpack.c.bf16 %v439_v37, %v438_v36  ;;  %v596_v42 = vld [vmem:[#allocation2 + $0x60] sm:$0xff]  ;;  %v597_v43 = vld [vmem:[#allocation2 + $0x68] sm:$0xff]  ;;  %v1922_v44 = vpack.c.bf16 %v602_v41, %v601_v40  ;;  %v603_v46 = vld [vmem:[#allocation5 + $0x70] sm:$0xff] }
  0x55   :  { %1707 = vmatmul.mubr.msk.f32.vlgmr.msra.gmra.mrb[0].mxu0 %vm109_vm1, %v2366_v18  ;;  %v1928_v45 = vpack.c.bf16 %v597_v43, %v596_v42  ;;  %v604_v47 = vld [vmem:[#allocation5 + $0x78] sm:$0xff]  ;;  %v598_v48 = vld [vmem:[#allocation2 + $0x70] sm:$0xff]  ;;  %v776_v52 = vld [vmem:[#allocation8] sm:$0xff] }
  0x56   :  { %1718 = vmatmul.mubr.msk.f32.vlgmr.msra.gmra.mrb[0].mxu1 %vm109_vm1, %v2371_v20  ;;  %1899 = vmatpush3.bf16.msra.mxu0 %v1898_v19  ;;  %v599_v49 = vld [vmem:[#allocation2 + $0x78] sm:$0xff]  ;;  %v1925_v50 = vpack.c.bf16 %v604_v47, %v603_v46  ;;  %v777_v53 = vld [vmem:[#allocation8 + $0x8] sm:$0xff]  ;;  %v772_v54 = vld [vmem:[#allocation7] sm:$0xff] }
  0x57   :  { %1905 = vmatpush3.bf16.msra.mxu1 %v1904_v21  ;;  %1900 = vmatprep.subr.bf16.mxu0 %v2203_v0  ;;  %v1931_v51 = vpack.c.bf16 %v599_v49, %v598_v48  ;;  %v1934_v55 = vpack.c.bf16 %v777_v53, %v776_v52  ;;  %v773_v56 = vld [vmem:[#allocation7 + $0x8] sm:$0xff]  ;;  %v778_v57 = vld [vmem:[#allocation8 + $0x10] sm:$0xff]  ;;  %v779_v58 = vld [vmem:[#allocation8 + $0x18] sm:$0xff] }
  0x58   :  { %1906 = vmatprep.subr.bf16.mxu1 %v2203_v0  ;;  %1728 = vmatprep.mubr.msk.f32.mxu0 %vm2204_vm0, %v2205_v1  ;;  %v1940_v59 = vpack.c.bf16 %v773_v56, %v772_v54  ;;  %v774_v60 = vld [vmem:[#allocation7 + $0x10] sm:$0xff]  ;;  %v775_v61 = vld [vmem:[#allocation7 + $0x18] sm:$0xff]  ;;  %v1937_v62 = vpack.c.bf16 %v779_v58, %v778_v57  ;;  %v946_v2 = vld [vmem:[#allocation8 + $0x20] sm:$0xff] }
  0x59   :  { %1739 = vmatprep.mubr.msk.f32.mxu1 %vm2204_vm0, %v2205_v1  ;;  %v1943_v63 = vpack.c.bf16 %v775_v61, %v774_v60  ;;  %v947_v3 = vld [vmem:[#allocation8 + $0x28] sm:$0xff]  ;;  %v1591_v4 = vld [vmem:[%s2547_s1 + $0x2] sm:$0x3]  ;;  %v948_v6 = vld [vmem:[#allocation8 + $0x30] sm:$0xff] }
  0x5a   :  { %1902 = vmatpush3.bf16.msra.mxu0 %v1901_v26  ;;  %v1946_v5 = vpack.c.bf16 %v947_v3, %v946_v2  ;;  %v949_v7 = vld [vmem:[#allocation8 + $0x38] sm:$0xff]  ;;  %v1111_v9 = vld [vmem:[#allocation8 + $0x40] sm:$0xff]  ;;  %v1112_v10 = vld [vmem:[#allocation8 + $0x48] sm:$0xff] }
  0x5b   :  { %1908 = vmatpush3.bf16.msra.mxu1 %v1907_v27  ;;  %1909 = vmatprep.subr.bf16.mxu0 %v2203_v0  ;;  %v1949_v8 = vpack.c.bf16 %v949_v7, %v948_v6  ;;  %v1958_v11 = vpack.c.bf16 %v1112_v10, %v1111_v9  ;;  %v1113_v12 = vld [vmem:[#allocation8 + $0x50] sm:$0xff]  ;;  %v1114_v13 = vld [vmem:[#allocation8 + $0x58] sm:$0xff]  ;;  %v1271_v15 = vld [vmem:[#allocation8 + $0x60] sm:$0xff] }
  0x5c   :  { %1915 = vmatprep.subr.bf16.mxu1 %v2203_v0  ;;  %v1961_v14 = vpack.c.bf16 %v1114_v13, %v1113_v12  ;;  %v1272_v16 = vld [vmem:[#allocation8 + $0x68] sm:$0xff]  ;;  %v1274_v19 = vld [vmem:[#allocation8 + $0x78] sm:$0xff]  ;;  %v1575_v23 = vld [vmem:[%s2551_s5] ss:$0 sm:$0xff] }
  0x5d   :  { %1729 = vmatmul.mubr.msk.f32.vlgmr.msra.gmra.mrb[2].mxu0 %vm109_vm1, %v2366_v18  ;;  %v1970_v17 = vpack.c.bf16 %v1272_v16, %v1271_v15  ;;  %v1580_v31 = vld [vmem:[%s2551_s5 + $0x1] ss:$0 sm:$0xff]  ;;  %v1589_v48 = vld [vmem:[%s2551_s5 + $0x3] ss:$0 sm:$0xff]  ;;  %v943_v9 = vld [vmem:[#allocation7 + $0x30] sm:$0xff] }
  0x5e   :  { %1740 = vmatmul.mubr.msk.f32.vlgmr.msra.gmra.mrb[2].mxu1 %vm109_vm1, %v2371_v20  ;;  %1911 = vmatpush3.bf16.msra.mxu0 %v1910_v32  ;;  %v941_v3 = vld [vmem:[#allocation7 + $0x20] sm:$0xff]  ;;  %v944_v10 = vld [vmem:[#allocation7 + $0x38] sm:$0xff]  ;;  %v1107_v13 = vld [vmem:[#allocation7 + $0x48] sm:$0xff] }
  0x5f   :  { %1917 = vmatpush3.bf16.msra.mxu1 %v1916_v33  ;;  %1912 = vmatprep.subr.bf16.mxu0 %v2203_v0  ;;  %v1106_v12 = vld [vmem:[#allocation7 + $0x40] sm:$0xff]  ;;  %v1108_v15 = vld [vmem:[#allocation7 + $0x50] sm:$0xff]  ;;  %v1109_v16 = vld [vmem:[#allocation7 + $0x58] sm:$0xff] }
  0x60   :  { %1918 = vmatprep.subr.bf16.mxu1 %v2203_v0  ;;  %1750 = vmatprep.mubr.msk.f32.mxu0 %vm2204_vm0, %v2205_v1 }
  0x61   :  { %1761 = vmatprep.mubr.msk.f32.mxu1 %vm2204_vm0, %v2205_v1 }
  0x62   :  { %1914 = vmatpush3.bf16.msra.mxu0 %v1913_v38 }
  0x63   :  { %1920 = vmatpush3.bf16.msra.mxu1 %v1919_v39  ;;  %1921 = vmatprep.subr.bf16.mxu0 %v2203_v0  ;;  %v1585_v39 = vld [vmem:[%s2551_s5 + $0x2] ss:$0 sm:$0xff] }
  0x64   :  { %1927 = vmatprep.subr.bf16.mxu1 %v2203_v0 }
  0x65   :  { %1751 = vmatmul.mubr.msk.f32.vlgmr.msra.gmra.mrb[4].mxu0 %vm109_vm1, %v2366_v18 }
  0x66   :  { %1762 = vmatmul.mubr.msk.f32.vlgmr.msra.gmra.mrb[4].mxu1 %vm109_vm1, %v2371_v20  ;;  %1923 = vmatpush3.bf16.msra.mxu0 %v1922_v44 }
  0x67   :  { %1929 = vmatpush3.bf16.msra.mxu1 %v1928_v45  ;;  %1924 = vmatprep.subr.bf16.mxu0 %v2203_v0 }
  0x68   :  { %1930 = vmatprep.subr.bf16.mxu1 %v2203_v0  ;;  %1772 = vmatprep.mubr.msk.f32.mxu0 %vm2204_vm0, %v2205_v1 }
  0x69   :  { %1783 = vmatprep.mubr.msk.f32.mxu1 %vm2204_vm0, %v2205_v1 }
  0x6a   :  { %1926 = vmatpush3.bf16.msra.mxu0 %v1925_v50 }
  0x6b   :  { %1932 = vmatpush3.bf16.msra.mxu1 %v1931_v51  ;;  %1933 = vmatprep.subr.bf16.mxu0 %v2203_v0 }
  0x6c   :  { %1939 = vmatprep.subr.bf16.mxu1 %v2203_v0 }
  0x6d   :  { %1773 = vmatmul.mubr.msk.f32.vlgmr.msra.gmra.mrb[6].mxu0 %vm109_vm1, %v2366_v18  ;;  %v1273_v18 = vld [vmem:[#allocation8 + $0x70] sm:$0xff] }
  0x6e   :  { %1784 = vmatmul.mubr.msk.f32.vlgmr.msra.gmra.mrb[6].mxu1 %vm109_vm1, %v2371_v20  ;;  %1794 = vmatprep.mubr.msk.f32.mxu0 %vm2204_vm0, %v2205_v1  ;;  %v1973_v20 = vpack.c.bf16 %v1274_v19, %v1273_v18  ;;  %v1266_v18 = vld [vmem:[#allocation7 + $0x60] sm:$0xff]  ;;  %v1267_v19 = vld [vmem:[#allocation7 + $0x68] sm:$0xff] }
  0x6f   :  { %1805 = vmatprep.mubr.msk.f32.mxu1 %vm2204_vm0, %v2205_v1  ;;  %1935 = vmatpush3.bf16.msra.mxu0 %v1934_v55 }
  0x70   :  { %1941 = vmatpush3.bf16.msra.mxu1 %v1940_v59  ;;  %1936 = vmatprep.subr.bf16.mxu0 %v2203_v0  ;;  %v100_v59 = vld [vmem:[%s2548_s2] sm:$0x3] }
  0x71   :  { %1942 = vmatprep.subr.bf16.mxu1 %v2203_v0 }
  0x73   :  { %1938 = vmatpush3.bf16.msra.mxu0 %v1937_v62 }
  0x74   :  { %1944 = vmatpush3.bf16.msra.mxu1 %v1943_v63  ;;  %1945 = vmatprep.subr.bf16.mxu0 %v2203_v0 }
  0x75   :  { %1951 = vmatprep.subr.bf16.mxu1 %v2203_v0 }
  0x76   :  { %1795 = vmatmul.mubr.msk.f32.vlgmr.msra.gmra.mrb[8].mxu0 %vm109_vm1, %v1591_v4 }
  0x77   :  { %1947 = vmatpush3.bf16.msra.mxu0 %v1946_v5  ;;  %1816 = vmatprep.mubr.msk.f32.mxu0 %vm2204_vm0, %v2205_v1 }
  0x78   :  { %1948 = vmatprep.subr.bf16.mxu0 %v2203_v0 }
  0x7b   :  { %1950 = vmatpush3.bf16.msra.mxu0 %v1949_v8 }
  0x7c   :  { %1957 = vmatprep.subr.bf16.mxu0 %v2203_v0 }
  0x7e   :  { %1817 = vmatmul.mubr.msk.f32.vlgmr.msra.gmra.mrb[10].mxu0 %vm109_vm1, %v1591_v4 }
  0x7f   :  { %1959 = vmatpush3.bf16.msra.mxu0 %v1958_v11  ;;  %1838 = vmatprep.mubr.msk.f32.mxu0 %vm2204_vm0, %v2205_v1  ;;  %v1955_v11 = vpack.c.bf16 %v944_v10, %v943_v9 }
  0x80   :  { %1960 = vmatprep.subr.bf16.mxu0 %v2203_v0 }
  0x83   :  { %1962 = vmatpush3.bf16.msra.mxu0 %v1961_v14  ;;  %v1964_v14 = vpack.c.bf16 %v1107_v13, %v1106_v12 }
  0x84   :  { %1969 = vmatprep.subr.bf16.mxu0 %v2203_v0 }
  0x86   :  { %1839 = vmatmul.mubr.msk.f32.vlgmr.msra.gmra.mrb[12].mxu0 %vm109_vm1, %v1591_v4 }
  0x87   :  { %1971 = vmatpush3.bf16.msra.mxu0 %v1970_v17  ;;  %1860 = vmatprep.mubr.msk.f32.mxu0 %vm2204_vm0, %v2205_v1  ;;  %v1967_v17 = vpack.c.bf16 %v1109_v16, %v1108_v15 }
  0x88   :  { %1972 = vmatprep.subr.bf16.mxu0 %v2203_v0 }
  0x8b   :  { %1974 = vmatpush3.bf16.msra.mxu0 %v1973_v20  ;;  %v1976_v20 = vpack.c.bf16 %v1267_v19, %v1266_v18 }
  0x8c   :  { %1981 = vmatprep.subr.bf16.mxu0 %v2203_v0 }
  0x8e   :  { %1861 = vmatmul.mubr.msk.f32.vlgmr.msra.gmra.mrb[14].mxu0 %vm109_vm1, %v1591_v4  ;;  %v942_v4 = vld [vmem:[#allocation7 + $0x28] sm:$0xff] }
  0x8f   :  { %1882 = vmatprep.mubr.msk.f32.mxu0 %vm2204_vm0, %v2205_v1  ;;  %v1952_v7 = vpack.c.bf16 %v942_v4, %v941_v3  ;;  %v1592_v4 = vld [vmem:[%s2548_s2 + $0x2] sm:$0x3] }
 0x128   :  { %v179_v21 = vpop.f32.mrb[0].mxu0 }
 0x129   :  { %v252_v22 = vpop.f32.mrb[0].mxu1  ;;  %v1708_v24 = vpop.f32.mrb[1].mxu0 }
 0x12a   :  { %v253_v25 = vadd.f32 %v252_v22, %v179_v21  ;;  %v1719_v26 = vpop.f32.mrb[1].mxu1  ;;  %v1268_v21 = vld [vmem:[#allocation7 + $0x70] sm:$0xff]  ;;  %v1269_v22 = vld [vmem:[#allocation7 + $0x78] sm:$0xff] }
 0x12c   :  { %v263_v27 = vadd.f32 %v1575_v23, %v253_v25  ;;  %v1979_v23 = vpack.c.bf16 %v1269_v22, %v1268_v21 }
 0x12e   :  { %v1576_v28 = vmul.f32 -1.442695, %v263_v27 }
 0x130   :  { %2001 = vpow2.f32 %v1576_v28  ;;  %v346_v29 = vpop.f32.mrb[2].mxu0 }
 0x131   :  { %v416_v30 = vpop.f32.mrb[2].mxu1  ;;  %v1730_v32 = vpop.f32.mrb[3].mxu0 }
 0x132   :  { %v417_v33 = vadd.f32 %v416_v30, %v346_v29  ;;  %v1741_v34 = vpop.f32.mrb[3].mxu1  ;;  %v1439_v32 = vld [vmem:[%s2555_s9] sm:$0xff] }
 0x134   :  { %v428_v35 = vadd.f32 %v1580_v31, %v417_v33  ;;  %v1441_v33 = vld [vmem:[%s2555_s9 + $0x10] sm:$0xff] }
 0x136   :  { %v1581_v36 = vmul.f32 -1.442695, %v428_v35  ;;  %v1442_v35 = vld [vmem:[%s2555_s9 + $0x18] sm:$0xff] }
 0x138   :  { %2003 = vpow2.f32 %v1581_v36  ;;  %v511_v37 = vpop.f32.mrb[4].mxu0  ;;  %v1985_v36 = vpack.c.bf16 %v1442_v35, %v1441_v33 }
 0x139   :  { %v581_v38 = vpop.f32.mrb[4].mxu1  ;;  %v1752_v40 = vpop.f32.mrb[5].mxu0 }
 0x13a   :  { %v2002_v41 = vpop.eup %2001  ;;  %v582_v42 = vadd.f32 %v581_v38, %v511_v37  ;;  %v1763_v43 = vpop.f32.mrb[5].mxu1  ;;  %v1595_v38 = vld [vmem:[%s2554_s8] ss:$0 sm:$0xff] }
 0x13b   :  { %v267_v44 = vadd.f32 1.0, %v2002_v41 }
 0x13c   :  { %v593_v45 = vadd.f32 %v1585_v39, %v582_v42 }
 0x13d   :  { %2005 = vrcp.f32 %v267_v44  ;;  %v1600_v44 = vld [vmem:[%s2554_s8 + $0x1] ss:$0 sm:$0xff] }
 0x13e   :  { %2007 = vtanh.f32 %v593_v45 }
 0x140   :  { %v671_v46 = vpop.f32.mrb[6].mxu0 }
 0x141   :  { %v741_v47 = vpop.f32.mrb[6].mxu1  ;;  %v1774_v49 = vpop.f32.mrb[7].mxu0 }
 0x142   :  { %v2004_v50 = vpop.eup %2003  ;;  %v742_v51 = vadd.f32 %v741_v47, %v671_v46  ;;  %v1785_v52 = vpop.f32.mrb[7].mxu1  ;;  %v1605_v49 = vld [vmem:[%s2554_s8 + $0x2] ss:$0 sm:$0xff] }
 0x143   :  { %v432_v53 = vadd.f32 1.0, %v2004_v50 }
 0x144   :  { %v753_v54 = vadd.f32 %v1589_v48, %v742_v51 }
 0x145   :  { %2009 = vrcp.f32 %v432_v53 }
 0x146   :  { %v1590_v55 = vmul.f32 -1.442695, %v753_v54 }
 0x147   :  { %v2006_v56 = vpop.eup %2005 }
 0x148   :  { %v2008_v57 = vpop.eup %2007  ;;  %2011 = vpow2.f32 %v1590_v55 }
 0x149   :  { %v761_v58 = vmul.f32 %v2008_v57, %v2006_v56  ;;  %v849_v24 = vpop.f32.mrb[8].mxu0  ;;  %v1609_v56 = vld [vmem:[%s2554_s8 + $0x3] ss:$0 sm:$0xff]  ;;  %s2206_s8 = smov [#allocation11]  }
 0x14a   :  { %v1796_v25 = vpop.f32.mrb[9].mxu0  ;;  %s1540_s14 = sshll.u32 %s2206_s8, 4  ;;  %s1541_s14 = int_to_ptr.vmem [resolvable:$true] %s1540_s14 }
 0x14b   :  { %s2121_s2 = scalar_lea.vmem %s1541_s14, 64  ;;  %p2126_p5 = scmp.lt.s32.totalorder %s1541_s14, %s1541_s14 }
 0x14c   :  { %p2122_p4 = scmp.ne.s32.totalorder %s1541_s14, %s2121_s2  ;;  %p2127_p6 = scmp.lt.s32.totalorder %s2121_s2, %s2121_s2 }
 0x14e   :  { %p2128_p7 = por %p2127_p6, %p2126_p5 }
 0x14f   :  { %v2010_v60 = vpop.eup %2009 }
 0x150   :  { %v760_v61 = vmul.f32 %v2010_v60, %v100_v59  ;;  %p2129_p8 = pnand %p2128_p7, %p2122_p4 }
 0x151   :  { %v1016_v26 = vpop.f32.mrb[10].mxu0 }
 0x152   :  { %v2012_v62 = vpop.eup %2011  ;;  %v762_v63 = vadd.f32 %v761_v58, %v760_v61  ;;  %v1818_v27 = vpop.f32.mrb[11].mxu0 }
 0x153   :  { %v757_v2 = vadd.f32 1.0, %v2012_v62 }
 0x154   :  { %2013 = vtanh.f32 %v762_v63  ;;  %767 = vst.msk [vmem:[#allocation13] sm:$0x3] %vm765_vm2, %v762_v63 }
 0x155   :  { %2015 = vrcp.f32 %v757_v2 }
 0x159   :  { %v1181_v28 = vpop.f32.mrb[12].mxu0 }
 0x15a   :  { %v1840_v29 = vpop.f32.mrb[13].mxu0 }
 0x15e   :  { %v2014_v5 = vpop.eup %2013 }
 0x15f   :  { %v2016_v6 = vpop.eup %2015 }
 0x160   :  { %v764_v8 = vmul.f32 %v2016_v6, %v2014_v5 }
 0x161   :  { %v1341_v30 = vpop.f32.mrb[14].mxu0 }
 0x162   :  { %1806 = vmatmul.mubr.msk.f32.vlgmr.msra.gmra.mrb[8].mxu1 %vm109_vm1, %v764_v8  ;;  %766 = vst.msk [vmem:[#allocation11] sm:$0x3] %vm765_vm2, %v764_v8  ;;  %v1862_v31 = vpop.f32.mrb[15].mxu0 }
 0x163   :  { %1953 = vmatpush3.bf16.msra.mxu1 %v1952_v7  ;;  %1827 = vmatprep.mubr.msk.f32.mxu1 %vm2204_vm0, %v2205_v1 }
 0x164   :  { %1954 = vmatprep.subr.bf16.mxu1 %v2203_v0 }
 0x167   :  { %1956 = vmatpush3.bf16.msra.mxu1 %v1955_v11 }
 0x168   :  { %1963 = vmatprep.subr.bf16.mxu1 %v2203_v0 }
 0x16a   :  { %1828 = vmatmul.mubr.msk.f32.vlgmr.msra.gmra.mrb[10].mxu1 %vm109_vm1, %v764_v8 }
 0x16b   :  { %1965 = vmatpush3.bf16.msra.mxu1 %v1964_v14  ;;  %1849 = vmatprep.mubr.msk.f32.mxu1 %vm2204_vm0, %v2205_v1 }
 0x16c   :  { %1966 = vmatprep.subr.bf16.mxu1 %v2203_v0 }
 0x16f   :  { %1968 = vmatpush3.bf16.msra.mxu1 %v1967_v17 }
 0x170   :  { %1975 = vmatprep.subr.bf16.mxu1 %v2203_v0 }
 0x172   :  { %1850 = vmatmul.mubr.msk.f32.vlgmr.msra.gmra.mrb[12].mxu1 %vm109_vm1, %v764_v8 }
 0x173   :  { %1977 = vmatpush3.bf16.msra.mxu1 %v1976_v20  ;;  %1871 = vmatprep.mubr.msk.f32.mxu1 %vm2204_vm0, %v2205_v1  ;;  %v1440_v1 = vld [vmem:[%s2555_s9 + $0x8] sm:$0xff] }
 0x174   :  { %1978 = vmatprep.subr.bf16.mxu1 %v2203_v0  ;;  %v1982_v34 = vpack.c.bf16 %v1440_v1, %v1439_v32 }
 0x176   :  { %1983 = vmatpush3.bf16.msra.mxu0 %v1982_v34 }
 0x177   :  { %1980 = vmatpush3.bf16.msra.mxu1 %v1979_v23  ;;  %1984 = vmatprep.subr.bf16.mxu0 %v2203_v0 }
 0x17a   :  { %1872 = vmatmul.mubr.msk.f32.vlgmr.msra.gmra.mrb[14].mxu1 %vm109_vm1, %v764_v8  ;;  %1986 = vmatpush3.bf16.msra.mxu0 %v1985_v36 }
 0x235   :  { %v922_v37 = vpop.f32.mrb[8].mxu1 }
 0x236   :  { %v923_v39 = vadd.f32 %v922_v37, %v849_v24  ;;  %v1807_v40 = vpop.f32.mrb[9].mxu1 }
 0x238   :  { %v933_v41 = vadd.f32 %v1595_v38, %v923_v39 }
 0x23a   :  { %v1596_v42 = vmul.f32 -1.442695, %v933_v41 }
 0x23c   :  { %2017 = vpow2.f32 %v1596_v42 }
 0x23d   :  { %v1086_v43 = vpop.f32.mrb[10].mxu1 }
 0x23e   :  { %v1087_v45 = vadd.f32 %v1086_v43, %v1016_v26  ;;  %v1829_v46 = vpop.f32.mrb[11].mxu1 }
 0x240   :  { %v1098_v47 = vadd.f32 %v1600_v44, %v1087_v45 }
 0x242   :  { %v1601_v0 = vmul.f32 -1.442695, %v1098_v47 }
 0x244   :  { %2019 = vpow2.f32 %v1601_v0 }
 0x245   :  { %v1251_v48 = vpop.f32.mrb[12].mxu1 }
 0x246   :  { %v2018_v50 = vpop.eup %2017  ;;  %v1252_v51 = vadd.f32 %v1251_v48, %v1181_v28  ;;  %v1851_v52 = vpop.f32.mrb[13].mxu1 }
 0x247   :  { %v937_v53 = vadd.f32 1.0, %v2018_v50 }
 0x248   :  { %v1263_v54 = vadd.f32 %v1605_v49, %v1252_v51 }
 0x249   :  { %2021 = vrcp.f32 %v937_v53 }
 0x24a   :  { %2023 = vtanh.f32 %v1263_v54 }
 0x24d   :  { %v1411_v55 = vpop.f32.mrb[14].mxu1 }
 0x24e   :  { %v2020_v57 = vpop.eup %2019  ;;  %v1412_v58 = vadd.f32 %v1411_v55, %v1341_v30  ;;  %v1873_v59 = vpop.f32.mrb[15].mxu1 }
 0x24f   :  { %v1102_v60 = vadd.f32 1.0, %v2020_v57 }
 0x250   :  { %v1423_v61 = vadd.f32 %v1609_v56, %v1412_v58 }
 0x251   :  { %2025 = vrcp.f32 %v1102_v60 }
 0x252   :  { %v1610_v62 = vmul.f32 -1.442695, %v1423_v61 }
 0x253   :  { %v2022_v63 = vpop.eup %2021 }
 0x254   :  { %v2024_v2 = vpop.eup %2023  ;;  %2027 = vpow2.f32 %v1610_v62 }
 0x255   :  { %v1431_v3 = vmul.f32 %v2024_v2, %v2022_v63 }
 0x25b   :  { %v2026_v5 = vpop.eup %2025 }
 0x25c   :  { %v1430_v6 = vmul.f32 %v2026_v5, %v1592_v4 }
 0x25e   :  { %v2028_v7 = vpop.eup %2027  ;;  %v1432_v8 = vadd.f32 %v1431_v3, %v1430_v6 }
 0x25f   :  { %v1427_v9 = vadd.f32 1.0, %v2028_v7 }
 0x260   :  { %2029 = vtanh.f32 %v1432_v8  ;;  %1438 = vst.msk [vmem:[#allocation13 + $0x2] sm:$0x3] %vm765_vm2, %v1432_v8 }
 0x261   :  { %2031 = vrcp.f32 %v1427_v9 }
 0x26a   :  { %v2030_v10 = vpop.eup %2029 }
 0x26b   :  { %v2032_v11 = vpop.eup %2031 }
 0x26c   :  { %v1434_v12 = vmul.f32 %v2032_v11, %v2030_v10 }
 0x26e   :  { %1883 = vmatmul.mubr.msk.f32.vlgmr.msra.gmra.mrb[16].mxu0 %vm109_vm1, %v1434_v12  ;;  %1436 = vst.msk [vmem:[#allocation11 + $0x2] sm:$0x3] %vm765_vm2, %v1434_v12 }
 0x26f   :  { %2132 = shalt.err (!%p2129_p8)
}
 0x270   :  { %s2133_s15 = scalar_lea.hbm %s2558_s12, 64 }
 0x271   :  { %p2134_p9 = scmp.ne.s32.totalorder %s2558_s12, %s2133_s15  ;;  %p2137_p10 = scmp.lt.u32.totalorder %s2133_s15, %s2558_s12 }
 0x273   :  { %p2139_p11 = pnand %p2137_p10, %p2134_p9 }
 0x275   :  { %2142 = shalt.err (!%p2139_p11)
}
 0x276   :  { %s2207_s17 = smov 32   ;;  %s2208_s19 = smov 2  }
 0x277   :  { %1546 = dma.vmem_to_hbm [thread:$0]  %s1541_s14, 64, %s2558_s12, [#allocation12], %s2207_s17, %s2207_s17, %s2208_s19  }
 0x278   :  { %s2209_s25 = smov [#allocation13]  }
 0x279   :  { %s1552_s6 = sshll.u32 %s2209_s25, 4  ;;  %s1553_s6 = int_to_ptr.vmem [resolvable:$true] %s1552_s6 }
 0x27a   :  { %s2143_s18 = scalar_lea.vmem %s1553_s6, 64  ;;  %p2148_p13 = scmp.lt.s32.totalorder %s1553_s6, %s1553_s6 }
 0x27b   :  { %p2144_p12 = scmp.ne.s32.totalorder %s1553_s6, %s2143_s18  ;;  %p2149_p0 = scmp.lt.s32.totalorder %s2143_s18, %s2143_s18 }
 0x27d   :  { %p2150_p1 = por %p2149_p0, %p2148_p13 }
 0x27f   :  { %p2151_p2 = pnand %p2150_p1, %p2144_p12 }
 0x281   :  { %2154 = shalt.err (!%p2151_p2)
}
 0x282   :  { %s2155_s21 = scalar_lea.hbm %s2559_s13, 64 }
 0x283   :  { %p2156_p3 = scmp.ne.s32.totalorder %s2559_s13, %s2155_s21  ;;  %p2159_p4 = scmp.lt.u32.totalorder %s2155_s21, %s2559_s13 }
 0x285   :  { %p2161_p5 = pnand %p2159_p4, %p2156_p3 }
 0x287   :  { %2164 = shalt.err (!%p2161_p5)
}
 0x288   :  { %1558 = dma.vmem_to_hbm [thread:$0]  %s1553_s6, 64, %s2559_s13, [#allocation12], %s2207_s17, %s2207_s17, %s2208_s19   ;;  %vm1523_vm3 = vcmask 58368  }
 0x289   :  { %v1611_v13 = vld [vmem:[%s2556_s10] ss:$0 sm:$0xff]  ;;  %s2210_s8 = smov [#allocation10]  }
 0x28a   :  { %s1531_s14 = sshll.u32 %s2210_s8, 4  ;;  %s1532_s14 = int_to_ptr.vmem [resolvable:$true] %s1531_s14 }
 0x28b   :  { %s2165_s2 = scalar_lea.vmem %s1532_s14, 32  ;;  %p2170_p7 = scmp.lt.s32.totalorder %s1532_s14, %s1532_s14 }
 0x28c   :  { %p2166_p6 = scmp.ne.s32.totalorder %s1532_s14, %s2165_s2  ;;  %p2171_p8 = scmp.lt.s32.totalorder %s2165_s2, %s2165_s2 }
 0x28e   :  { %p2172_p9 = por %p2171_p8, %p2170_p7 }
 0x290   :  { %p2173_p10 = pnand %p2172_p9, %p2166_p6 }
 0x341   :  { %v1519_v14 = vpop.f32.mrb[16].mxu0 }
 0x342   :  { %v1520_v15 = vadd.f32 %v1611_v13, %v1519_v14  ;;  %v1884_v16 = vpop.f32.mrb[17].mxu0 }
 0x344   :  { %1524 = vst.msk [vmem:[#allocation10] sm:$0x3] %vm1523_vm3, %v1520_v15 }
 0x345   :  { %2176 = shalt.err (!%p2173_p10)
}
 0x346   :  { %s2177_s28 = scalar_lea.hbm %s2557_s11, 32 }
 0x347   :  { %p2178_p11 = scmp.ne.s32.totalorder %s2557_s11, %s2177_s28  ;;  %p2181_p12 = scmp.lt.u32.totalorder %s2177_s28, %s2557_s11 }
 0x349   :  { %p2183_p13 = pnand %p2181_p12, %p2178_p11 }
 0x34b   :  { %2186 = shalt.err (!%p2183_p13)
}
 0x34c   :  { %1534 = dma.vmem_to_hbm [thread:$0]  %s1532_s14, 32, %s2557_s11, [#allocation4]  }
 0x34d   :  { %2193 = dma.done.wait [#allocation4], 32  }
 0x34e   :  { %2194 = vsyncadd [#allocation4], 4294967264 }
 0x34f   :  { %2195 = dma.done.wait [#allocation12], 128  }
 0x350   :  { %2196 = vsyncadd [#allocation12], 4294967168 }
 0x351   :  { %1568 = vsyncpa [#allocation3], 1 }
 0x352   :  { %1569 = vsyncpa [#allocation6], 1 }
 0x353   :  { %1570 = vsyncpa [#allocation9], 1 }
 0x354   :  { %1571 = vsyncpa [#allocation4], 1 }
 0x355   :  { %1572 = vsyncpa [#allocation12], 1 }

</bundles_post_ra>
